<compile_context>
chip_gen: v7x
topology: tpu7x:2x2x1
jax: 0.10.0
libtpu: 0.0.40
codegen_flags: <defaults>
</compile_context>

<pallas_src>
import functools

import jax
import jax.numpy as jnp
from jax import lax
from jax.experimental import pallas as pl
from jax.experimental.pallas import tpu as pltpu


def _lstm_fc_kernel(x_ref, w_ih_ref, w_hh_ref, b_ref, w_fc_ref, b_fc_ref,
                    out_ref, *, seq_len, batch):
    """Whole forward in one grid step.

    x_ref    : (T*B, I)  f32   time-major, batch padded to a multiple of 8
    w_ih_ref : (I, 4H)   bf16  input->gates weight (pre-transposed, i/f/o cols *0.5)
    w_hh_ref : (H, 4H)   bf16  hidden->gates weight (pre-transposed, i/f/o cols *0.5)
    b_ref    : (1, 4H)   f32   b_ih + b_hh (i/f/o cols *0.5)
    w_fc_ref : (H, O)    bf16  final Linear weight (pre-transposed)
    b_fc_ref : (1, O)    f32   final Linear bias
    out_ref  : (B, O)    f32
    """
    T, B = seq_len, batch
    H = w_hh_ref.shape[0]

    # --- Hoisted input projection: one MXU matmul for all time steps.
    x = x_ref[...].astype(jnp.bfloat16)                     # (T*B, I)
    xg = jnp.dot(x, w_ih_ref[...],
                 preferred_element_type=jnp.float32)        # (T*B, 4H) f32
    xg = xg + b_ref[...]                                    # bias folded in once

    w_hh = w_hh_ref[...]                                    # (H, 4H) bf16, load once

    # --- Hoisted gate fix-up constants (sigmoid via tanh identity):
    #     i/f/o lanes: 0.5*tanh(.) + 0.5 ; g lanes: tanh(.)
    col = lax.broadcasted_iota(jnp.int32, (1, 4 * H), 1)
    is_g = jnp.logical_and(col >= 2 * H, col < 3 * H)
    act_scale = jnp.where(is_g, 1.0, 0.5).astype(jnp.float32)
    act_shift = jnp.where(is_g, 0.0, 0.5).astype(jnp.float32)

    h = jnp.zeros((B, H), jnp.float32)
    c = jnp.zeros((B, H), jnp.float32)

    # --- Recurrence: only h @ W_hh per step; fully unrolled (static, small T).
    # PyTorch gate ordering is [i, f, g, o].
    for t in range(T):
        # Tile-aligned (8, 128) slab: time-major with static, 8-aligned offsets.
        g_pre = xg[t * B:(t + 1) * B, :] + jnp.dot(
            h.astype(jnp.bfloat16), w_hh, preferred_element_type=jnp.float32)
        # ONE full-vreg tanh per step + fused mul-add fix-up.
        act = act_scale * jnp.tanh(g_pre) + act_shift
        i_g = act[:, 0 * H:1 * H]
        f_g = act[:, 1 * H:2 * H]
        g_g = act[:, 2 * H:3 * H]
        o_g = act[:, 3 * H:4 * H]
        c = f_g * c + i_g * g_g
        h = o_g * jnp.tanh(c)

    # --- fc(dropout(hn[-1])) with dropout = identity (eval mode).
    out_ref[...] = (jnp.dot(h.astype(jnp.bfloat16), w_fc_ref[...],
                            preferred_element_type=jnp.float32)
                    + b_fc_ref[...])


def lstm_model_forward(x_btI, params):
    """x_btI: (B, T, I) float32 batch-first. Returns (B, O) float32."""
    B, T, I = x_btI.shape
    H = params["w_hh_k"].shape[0]        # (H, 4H)
    O = params["w_fc_k"].shape[1]

    # Layout prep in the wrapper (tiny, fuses under jit): time-major, batch
    # padded to a multiple of 8, flattened to (T*B_pad, I). Keeps every
    # per-step gate fetch a tile-aligned (8, 128) slab inside the kernel.
    B_pad = max(8, ((B + 7) // 8) * 8)
    x_prep = jnp.transpose(x_btI, (1, 0, 2))                     # (T, B, I)
    if B_pad != B:
        x_prep = jnp.pad(x_prep, ((0, 0), (0, B_pad - B), (0, 0)))
    x_prep = x_prep.reshape(T * B_pad, I)                        # f32; bf16 cast in-kernel

    kernel = functools.partial(_lstm_fc_kernel, seq_len=T, batch=B_pad)

    out = pl.pallas_call(
        kernel,
        out_shape=jax.ShapeDtypeStruct((B_pad, O), jnp.float32),
        grid=(1,),
        in_specs=[
            pl.BlockSpec((T * B_pad, I), lambda i: (0, 0)),   # x, time-major
            pl.BlockSpec((I, 4 * H), lambda i: (0, 0)),       # W_ih^T (folded)
            pl.BlockSpec((H, 4 * H), lambda i: (0, 0)),       # W_hh^T (folded)
            pl.BlockSpec((1, 4 * H), lambda i: (0, 0)),       # b_ih + b_hh (folded)
            pl.BlockSpec((H, O), lambda i: (0, 0)),           # W_fc^T
            pl.BlockSpec((1, O), lambda i: (0, 0)),           # b_fc
        ],
        out_specs=pl.BlockSpec((B_pad, O), lambda i: (0, 0)),
        compiler_params=pltpu.CompilerParams(
            dimension_semantics=("arbitrary",),
        ),
    )(x_prep, params["w_ih_k"], params["w_hh_k"], params["b_k"],
      params["w_fc_k"], params["b_fc"])
    return out[:B]


def init_params(key, input_size, hidden_size, output_size):
    """PyTorch-shaped U(-k, k) init; produces kernel-ready folded/bf16 tensors
    (done once, so no per-call wrapper passes) plus f32 reference copies."""
    H = hidden_size
    k_lstm = 1.0 / jnp.sqrt(H)
    k_fc = 1.0 / jnp.sqrt(H)
    ks = jax.random.split(key, 6)
    w_ih = jax.random.uniform(ks[0], (4 * H, input_size),
                              minval=-k_lstm, maxval=k_lstm, dtype=jnp.float32)
    w_hh = jax.random.uniform(ks[1], (4 * H, H),
                              minval=-k_lstm, maxval=k_lstm, dtype=jnp.float32)
    b_ih = jax.random.uniform(ks[2], (4 * H,),
                              minval=-k_lstm, maxval=k_lstm, dtype=jnp.float32)
    b_hh = jax.random.uniform(ks[3], (4 * H,),
                              minval=-k_lstm, maxval=k_lstm, dtype=jnp.float32)
    w_fc = jax.random.uniform(ks[4], (output_size, H),
                              minval=-k_fc, maxval=k_fc, dtype=jnp.float32)
    b_fc = jax.random.uniform(ks[5], (output_size,),
                              minval=-k_fc, maxval=k_fc, dtype=jnp.float32)

    w_ih_t = w_ih.T                       # (I, 4H)
    w_hh_t = w_hh.T                       # (H, 4H)
    b = (b_ih + b_hh)[None, :]            # (1, 4H)

    # Fold the z/2 halving (sigmoid(z) = 0.5*tanh(z/2) + 0.5) into the i/f/o
    # gate columns of the weights AND bias (exact: power-of-2 scale).
    col_scale = jnp.concatenate([
        jnp.full((H,), 0.5, jnp.float32),   # i
        jnp.full((H,), 0.5, jnp.float32),   # f
        jnp.full((H,), 1.0, jnp.float32),   # g (tanh gate, unscaled)
        jnp.full((H,), 0.5, jnp.float32),   # o
    ])[None, :]                             # (1, 4H)

    return {
        # kernel-ready (pre-folded; bf16 MXU inputs, f32 biases)
        "w_ih_k": (w_ih_t * col_scale).astype(jnp.bfloat16),
        "w_hh_k": (w_hh_t * col_scale).astype(jnp.bfloat16),
        "b_k": (b * col_scale).astype(jnp.float32),
        "w_fc_k": w_fc.T.astype(jnp.bfloat16),
        "b_fc": b_fc[None, :].astype(jnp.float32),
        # unfolded f32 copies for the pure-JAX reference
        "w_ih": w_ih_t,
        "w_hh": w_hh_t,
        "b": b,
        "w_fc": w_fc.T,
    }


def reference_forward(x_btI, params):
    """Pure-JAX reference (lax.scan) mirroring the kernel's bf16/f32 mix,
    using standard sigmoid on the UNfolded weights."""
    B, T, I = x_btI.shape
    H = params["w_hh"].shape[0]
    bf = jnp.bfloat16

    w_ih = params["w_ih"].astype(bf)
    w_hh = params["w_hh"].astype(bf)
    w_fc = params["w_fc"].astype(bf)
    b = params["b"].astype(jnp.float32)
    b_fc = params["b_fc"].astype(jnp.float32)

    h0 = jnp.zeros((B, H), jnp.float32)
    c0 = jnp.zeros((B, H), jnp.float32)
    x_tbi = jnp.transpose(x_btI, (1, 0, 2)).astype(bf)

    def step(carry, x_t):
        h, c = carry
        gates = (jnp.dot(x_t, w_ih, preferred_element_type=jnp.float32)
                 + jnp.dot(h.astype(bf), w_hh, preferred_element_type=jnp.float32)
                 + b)
        i = jax.nn.sigmoid(gates[:, 0 * H:1 * H])
        f = jax.nn.sigmoid(gates[:, 1 * H:2 * H])
        g = jnp.tanh(gates[:, 2 * H:3 * H])
        o = jax.nn.sigmoid(gates[:, 3 * H:4 * H])
        c_new = f * c + i * g
        h_new = o * jnp.tanh(c_new)
        return (h_new, c_new), None

    (hT, _), _ = jax.lax.scan(step, (h0, c0), x_tbi)
    return jnp.dot(hT.astype(bf), w_fc, preferred_element_type=jnp.float32) + b_fc


if __name__ == "__main__":
    B, T, I, H, O = 4, 8, 16, 32, 8

    key = jax.random.PRNGKey(0)
    k_x, k_p = jax.random.split(key)
    x = jax.random.normal(k_x, (B, T, I), dtype=jnp.float32)
    params = init_params(k_p, I, H, O)

    fwd = jax.jit(lstm_model_forward)
    out = jax.block_until_ready(fwd(x, params))

    ref = jax.block_until_ready(reference_forward(x, params))
    assert out.shape == (B, O), f"bad output shape {out.shape}"
    assert jnp.allclose(out, ref, atol=2e-3, rtol=2e-3), "mismatch vs reference"

    print("KERNEL_OK")
</pallas_src>

<mosaic_0001>
module attributes {stable_mosaic.version = 11 : i64} {
  func.func @_lstm_fc_kernel(%arg0: i32, %arg1: memref<64x16xf32, #tpu.memory_space<vmem>>, %arg2: memref<16x128xbf16, #tpu.memory_space<vmem>>, %arg3: memref<32x128xbf16, #tpu.memory_space<vmem>>, %arg4: memref<1x128xf32, #tpu.memory_space<vmem>>, %arg5: memref<32x8xbf16, #tpu.memory_space<vmem>>, %arg6: memref<1x8xf32, #tpu.memory_space<vmem>>, %arg7: memref<8x8xf32, #tpu.memory_space<vmem>>) attributes {dimension_semantics = [#tpu.dimension_semantics<arbitrary>], iteration_bounds = array<i64: 1>, scalar_prefetch = 0 : i64, scratch_operands = 0 : i64, tpu.core_type = #tpu.core_type<tc>, window_params = [{pipeline_mode = #tpu.pipeline_mode<synchronous>, transform_indices = @transform_0, window_bounds = array<i64: 64, 16>}, {pipeline_mode = #tpu.pipeline_mode<synchronous>, transform_indices = @transform_1, window_bounds = array<i64: 16, 128>}, {pipeline_mode = #tpu.pipeline_mode<synchronous>, transform_indices = @transform_2, window_bounds = array<i64: 32, 128>}, {pipeline_mode = #tpu.pipeline_mode<synchronous>, transform_indices = @transform_3, window_bounds = array<i64: 1, 128>}, {pipeline_mode = #tpu.pipeline_mode<synchronous>, transform_indices = @transform_4, window_bounds = array<i64: 32, 8>}, {pipeline_mode = #tpu.pipeline_mode<synchronous>, transform_indices = @transform_5, window_bounds = array<i64: 1, 8>}, {pipeline_mode = #tpu.pipeline_mode<synchronous>, transform_indices = @transform_6, window_bounds = array<i64: 8, 8>}]} {
    %c0 = arith.constant 0 : index
    %c0_0 = arith.constant 0 : index
    %0 = vector.load %arg1[%c0, %c0_0] : memref<64x16xf32, #tpu.memory_space<vmem>>, vector<64x16xf32>
    %1 = arith.truncf %0 : vector<64x16xf32> to vector<64x16xbf16>
    %c0_1 = arith.constant 0 : index
    %c0_2 = arith.constant 0 : index
    %2 = vector.load %arg2[%c0_1, %c0_2] : memref<16x128xbf16, #tpu.memory_space<vmem>>, vector<16x128xbf16>
    %cst = arith.constant dense<0.000000e+00> : vector<64x128xf32>
    %3 = tpu.matmul %1, %2, %cst {dimension_numbers = #tpu.dot_dimension_numbers<[1], [0], [0], [1], [0, 0, 1, 1], [], []>} : vector<64x16xbf16>, vector<16x128xbf16>, vector<64x128xf32> -> vector<64x128xf32>
    %c0_3 = arith.constant 0 : index
    %c0_4 = arith.constant 0 : index
    %4 = vector.load %arg4[%c0_3, %c0_4] : memref<1x128xf32, #tpu.memory_space<vmem>>, vector<1x128xf32>
    %5 = vector.broadcast %4 : vector<1x128xf32> to vector<64x128xf32>
    %6 = arith.addf %3, %5 : vector<64x128xf32>
    %c0_5 = arith.constant 0 : index
    %c0_6 = arith.constant 0 : index
    %7 = vector.load %arg3[%c0_5, %c0_6] : memref<32x128xbf16, #tpu.memory_space<vmem>>, vector<32x128xbf16>
    %8 = tpu.iota {dimensions = array<i32: 1>} : vector<1x128xi32>
    %c64_i32 = arith.constant 64 : i32
    %9 = vector.broadcast %c64_i32 : i32 to vector<1x128xi32>
    %10 = arith.cmpi sge, %8, %9 : vector<1x128xi32>
    %c96_i32 = arith.constant 96 : i32
    %11 = vector.broadcast %c96_i32 : i32 to vector<1x128xi32>
    %12 = arith.cmpi slt, %8, %11 : vector<1x128xi32>
    %13 = arith.andi %10, %12 : vector<1x128xi1>
    %cst_7 = arith.constant 1.000000e+00 : f32
    %cst_8 = arith.constant 5.000000e-01 : f32
    %14 = vector.broadcast %cst_7 : f32 to vector<1x128xf32>
    %15 = vector.broadcast %cst_8 : f32 to vector<1x128xf32>
    %16 = arith.select %13, %14, %15 : vector<1x128xi1>, vector<1x128xf32>
    %cst_9 = arith.constant 0.000000e+00 : f32
    %cst_10 = arith.constant 5.000000e-01 : f32
    %17 = vector.broadcast %cst_9 : f32 to vector<1x128xf32>
    %18 = vector.broadcast %cst_10 : f32 to vector<1x128xf32>
    %19 = arith.select %13, %17, %18 : vector<1x128xi1>, vector<1x128xf32>
    %cst_11 = arith.constant 0.000000e+00 : f32
    %20 = vector.broadcast %cst_11 : f32 to vector<8x32xf32>
    %cst_12 = arith.constant 0.000000e+00 : f32
    %21 = vector.broadcast %cst_12 : f32 to vector<8x32xf32>
    %22 = vector.extract_strided_slice %6 {offsets = [0, 0], sizes = [8, 128], strides = [1, 1]} : vector<64x128xf32> to vector<8x128xf32>
    %23 = arith.truncf %20 : vector<8x32xf32> to vector<8x32xbf16>
    %cst_13 = arith.constant dense<0.000000e+00> : vector<8x128xf32>
    %24 = tpu.matmul %23, %7, %cst_13 {dimension_numbers = #tpu.dot_dimension_numbers<[1], [0], [0], [1], [0, 0, 1, 1], [], []>} : vector<8x32xbf16>, vector<32x128xbf16>, vector<8x128xf32> -> vector<8x128xf32>
    %25 = arith.addf %22, %24 : vector<8x128xf32>
    %26 = math.tanh %25 : vector<8x128xf32>
    %27 = vector.broadcast %16 : vector<1x128xf32> to vector<8x128xf32>
    %28 = arith.mulf %27, %26 : vector<8x128xf32>
    %29 = vector.broadcast %19 : vector<1x128xf32> to vector<8x128xf32>
    %30 = arith.addf %28, %29 : vector<8x128xf32>
    %31 = vector.extract_strided_slice %30 {offsets = [0, 0], sizes = [8, 32], strides = [1, 1]} : vector<8x128xf32> to vector<8x32xf32>
    %32 = vector.extract_strided_slice %30 {offsets = [0, 32], sizes = [8, 32], strides = [1, 1]} : vector<8x128xf32> to vector<8x32xf32>
    %33 = vector.extract_strided_slice %30 {offsets = [0, 64], sizes = [8, 32], strides = [1, 1]} : vector<8x128xf32> to vector<8x32xf32>
    %34 = vector.extract_strided_slice %30 {offsets = [0, 96], sizes = [8, 32], strides = [1, 1]} : vector<8x128xf32> to vector<8x32xf32>
    %35 = arith.mulf %32, %21 : vector<8x32xf32>
    %36 = arith.mulf %31, %33 : vector<8x32xf32>
    %37 = arith.addf %35, %36 : vector<8x32xf32>
    %38 = math.tanh %37 : vector<8x32xf32>
    %39 = arith.mulf %34, %38 : vector<8x32xf32>
    %40 = vector.extract_strided_slice %6 {offsets = [8, 0], sizes = [8, 128], strides = [1, 1]} : vector<64x128xf32> to vector<8x128xf32>
    %41 = arith.truncf %39 : vector<8x32xf32> to vector<8x32xbf16>
    %cst_14 = arith.constant dense<0.000000e+00> : vector<8x128xf32>
    %42 = tpu.matmul %41, %7, %cst_14 {dimension_numbers = #tpu.dot_dimension_numbers<[1], [0], [0], [1], [0, 0, 1, 1], [], []>} : vector<8x32xbf16>, vector<32x128xbf16>, vector<8x128xf32> -> vector<8x128xf32>
    %43 = arith.addf %40, %42 : vector<8x128xf32>
    %44 = math.tanh %43 : vector<8x128xf32>
    %45 = vector.broadcast %16 : vector<1x128xf32> to vector<8x128xf32>
    %46 = arith.mulf %45, %44 : vector<8x128xf32>
    %47 = vector.broadcast %19 : vector<1x128xf32> to vector<8x128xf32>
    %48 = arith.addf %46, %47 : vector<8x128xf32>
    %49 = vector.extract_strided_slice %48 {offsets = [0, 0], sizes = [8, 32], strides = [1, 1]} : vector<8x128xf32> to vector<8x32xf32>
    %50 = vector.extract_strided_slice %48 {offsets = [0, 32], sizes = [8, 32], strides = [1, 1]} : vector<8x128xf32> to vector<8x32xf32>
    %51 = vector.extract_strided_slice %48 {offsets = [0, 64], sizes = [8, 32], strides = [1, 1]} : vector<8x128xf32> to vector<8x32xf32>
    %52 = vector.extract_strided_slice %48 {offsets = [0, 96], sizes = [8, 32], strides = [1, 1]} : vector<8x128xf32> to vector<8x32xf32>
    %53 = arith.mulf %50, %37 : vector<8x32xf32>
    %54 = arith.mulf %49, %51 : vector<8x32xf32>
    %55 = arith.addf %53, %54 : vector<8x32xf32>
    %56 = math.tanh %55 : vector<8x32xf32>
    %57 = arith.mulf %52, %56 : vector<8x32xf32>
    %58 = vector.extract_strided_slice %6 {offsets = [16, 0], sizes = [8, 128], strides = [1, 1]} : vector<64x128xf32> to vector<8x128xf32>
    %59 = arith.truncf %57 : vector<8x32xf32> to vector<8x32xbf16>
    %cst_15 = arith.constant dense<0.000000e+00> : vector<8x128xf32>
    %60 = tpu.matmul %59, %7, %cst_15 {dimension_numbers = #tpu.dot_dimension_numbers<[1], [0], [0], [1], [0, 0, 1, 1], [], []>} : vector<8x32xbf16>, vector<32x128xbf16>, vector<8x128xf32> -> vector<8x128xf32>
    %61 = arith.addf %58, %60 : vector<8x128xf32>
    %62 = math.tanh %61 : vector<8x128xf32>
    %63 = vector.broadcast %16 : vector<1x128xf32> to vector<8x128xf32>
    %64 = arith.mulf %63, %62 : vector<8x128xf32>
    %65 = vector.broadcast %19 : vector<1x128xf32> to vector<8x128xf32>
    %66 = arith.addf %64, %65 : vector<8x128xf32>
    %67 = vector.extract_strided_slice %66 {offsets = [0, 0], sizes = [8, 32], strides = [1, 1]} : vector<8x128xf32> to vector<8x32xf32>
    %68 = vector.extract_strided_slice %66 {offsets = [0, 32], sizes = [8, 32], strides = [1, 1]} : vector<8x128xf32> to vector<8x32xf32>
    %69 = vector.extract_strided_slice %66 {offsets = [0, 64], sizes = [8, 32], strides = [1, 1]} : vector<8x128xf32> to vector<8x32xf32>
    %70 = vector.extract_strided_slice %66 {offsets = [0, 96], sizes = [8, 32], strides = [1, 1]} : vector<8x128xf32> to vector<8x32xf32>
    %71 = arith.mulf %68, %55 : vector<8x32xf32>
    %72 = arith.mulf %67, %69 : vector<8x32xf32>
    %73 = arith.addf %71, %72 : vector<8x32xf32>
    %74 = math.tanh %73 : vector<8x32xf32>
    %75 = arith.mulf %70, %74 : vector<8x32xf32>
    %76 = vector.extract_strided_slice %6 {offsets = [24, 0], sizes = [8, 128], strides = [1, 1]} : vector<64x128xf32> to vector<8x128xf32>
    %77 = arith.truncf %75 : vector<8x32xf32> to vector<8x32xbf16>
    %cst_16 = arith.constant dense<0.000000e+00> : vector<8x128xf32>
    %78 = tpu.matmul %77, %7, %cst_16 {dimension_numbers = #tpu.dot_dimension_numbers<[1], [0], [0], [1], [0, 0, 1, 1], [], []>} : vector<8x32xbf16>, vector<32x128xbf16>, vector<8x128xf32> -> vector<8x128xf32>
    %79 = arith.addf %76, %78 : vector<8x128xf32>
    %80 = math.tanh %79 : vector<8x128xf32>
    %81 = vector.broadcast %16 : vector<1x128xf32> to vector<8x128xf32>
    %82 = arith.mulf %81, %80 : vector<8x128xf32>
    %83 = vector.broadcast %19 : vector<1x128xf32> to vector<8x128xf32>
    %84 = arith.addf %82, %83 : vector<8x128xf32>
    %85 = vector.extract_strided_slice %84 {offsets = [0, 0], sizes = [8, 32], strides = [1, 1]} : vector<8x128xf32> to vector<8x32xf32>
    %86 = vector.extract_strided_slice %84 {offsets = [0, 32], sizes = [8, 32], strides = [1, 1]} : vector<8x128xf32> to vector<8x32xf32>
    %87 = vector.extract_strided_slice %84 {offsets = [0, 64], sizes = [8, 32], strides = [1, 1]} : vector<8x128xf32> to vector<8x32xf32>
    %88 = vector.extract_strided_slice %84 {offsets = [0, 96], sizes = [8, 32], strides = [1, 1]} : vector<8x128xf32> to vector<8x32xf32>
    %89 = arith.mulf %86, %73 : vector<8x32xf32>
    %90 = arith.mulf %85, %87 : vector<8x32xf32>
    %91 = arith.addf %89, %90 : vector<8x32xf32>
    %92 = math.tanh %91 : vector<8x32xf32>
    %93 = arith.mulf %88, %92 : vector<8x32xf32>
    %94 = vector.extract_strided_slice %6 {offsets = [32, 0], sizes = [8, 128], strides = [1, 1]} : vector<64x128xf32> to vector<8x128xf32>
    %95 = arith.truncf %93 : vector<8x32xf32> to vector<8x32xbf16>
    %cst_17 = arith.constant dense<0.000000e+00> : vector<8x128xf32>
    %96 = tpu.matmul %95, %7, %cst_17 {dimension_numbers = #tpu.dot_dimension_numbers<[1], [0], [0], [1], [0, 0, 1, 1], [], []>} : vector<8x32xbf16>, vector<32x128xbf16>, vector<8x128xf32> -> vector<8x128xf32>
    %97 = arith.addf %94, %96 : vector<8x128xf32>
    %98 = math.tanh %97 : vector<8x128xf32>
    %99 = vector.broadcast %16 : vector<1x128xf32> to vector<8x128xf32>
    %100 = arith.mulf %99, %98 : vector<8x128xf32>
    %101 = vector.broadcast %19 : vector<1x128xf32> to vector<8x128xf32>
    %102 = arith.addf %100, %101 : vector<8x128xf32>
    %103 = vector.extract_strided_slice %102 {offsets = [0, 0], sizes = [8, 32], strides = [1, 1]} : vector<8x128xf32> to vector<8x32xf32>
    %104 = vector.extract_strided_slice %102 {offsets = [0, 32], sizes = [8, 32], strides = [1, 1]} : vector<8x128xf32> to vector<8x32xf32>
    %105 = vector.extract_strided_slice %102 {offsets = [0, 64], sizes = [8, 32], strides = [1, 1]} : vector<8x128xf32> to vector<8x32xf32>
    %106 = vector.extract_strided_slice %102 {offsets = [0, 96], sizes = [8, 32], strides = [1, 1]} : vector<8x128xf32> to vector<8x32xf32>
    %107 = arith.mulf %104, %91 : vector<8x32xf32>
    %108 = arith.mulf %103, %105 : vector<8x32xf32>
    %109 = arith.addf %107, %108 : vector<8x32xf32>
    %110 = math.tanh %109 : vector<8x32xf32>
    %111 = arith.mulf %106, %110 : vector<8x32xf32>
    %112 = vector.extract_strided_slice %6 {offsets = [40, 0], sizes = [8, 128], strides = [1, 1]} : vector<64x128xf32> to vector<8x128xf32>
    %113 = arith.truncf %111 : vector<8x32xf32> to vector<8x32xbf16>
    %cst_18 = arith.constant dense<0.000000e+00> : vector<8x128xf32>
    %114 = tpu.matmul %113, %7, %cst_18 {dimension_numbers = #tpu.dot_dimension_numbers<[1], [0], [0], [1], [0, 0, 1, 1], [], []>} : vector<8x32xbf16>, vector<32x128xbf16>, vector<8x128xf32> -> vector<8x128xf32>
    %115 = arith.addf %112, %114 : vector<8x128xf32>
    %116 = math.tanh %115 : vector<8x128xf32>
    %117 = vector.broadcast %16 : vector<1x128xf32> to vector<8x128xf32>
    %118 = arith.mulf %117, %116 : vector<8x128xf32>
    %119 = vector.broadcast %19 : vector<1x128xf32> to vector<8x128xf32>
    %120 = arith.addf %118, %119 : vector<8x128xf32>
    %121 = vector.extract_strided_slice %120 {offsets = [0, 0], sizes = [8, 32], strides = [1, 1]} : vector<8x128xf32> to vector<8x32xf32>
    %122 = vector.extract_strided_slice %120 {offsets = [0, 32], sizes = [8, 32], strides = [1, 1]} : vector<8x128xf32> to vector<8x32xf32>
    %123 = vector.extract_strided_slice %120 {offsets = [0, 64], sizes = [8, 32], strides = [1, 1]} : vector<8x128xf32> to vector<8x32xf32>
    %124 = vector.extract_strided_slice %120 {offsets = [0, 96], sizes = [8, 32], strides = [1, 1]} : vector<8x128xf32> to vector<8x32xf32>
    %125 = arith.mulf %122, %109 : vector<8x32xf32>
    %126 = arith.mulf %121, %123 : vector<8x32xf32>
    %127 = arith.addf %125, %126 : vector<8x32xf32>
    %128 = math.tanh %127 : vector<8x32xf32>
    %129 = arith.mulf %124, %128 : vector<8x32xf32>
    %130 = vector.extract_strided_slice %6 {offsets = [48, 0], sizes = [8, 128], strides = [1, 1]} : vector<64x128xf32> to vector<8x128xf32>
    %131 = arith.truncf %129 : vector<8x32xf32> to vector<8x32xbf16>
    %cst_19 = arith.constant dense<0.000000e+00> : vector<8x128xf32>
    %132 = tpu.matmul %131, %7, %cst_19 {dimension_numbers = #tpu.dot_dimension_numbers<[1], [0], [0], [1], [0, 0, 1, 1], [], []>} : vector<8x32xbf16>, vector<32x128xbf16>, vector<8x128xf32> -> vector<8x128xf32>
    %133 = arith.addf %130, %132 : vector<8x128xf32>
    %134 = math.tanh %133 : vector<8x128xf32>
    %135 = vector.broadcast %16 : vector<1x128xf32> to vector<8x128xf32>
    %136 = arith.mulf %135, %134 : vector<8x128xf32>
    %137 = vector.broadcast %19 : vector<1x128xf32> to vector<8x128xf32>
    %138 = arith.addf %136, %137 : vector<8x128xf32>
    %139 = vector.extract_strided_slice %138 {offsets = [0, 0], sizes = [8, 32], strides = [1, 1]} : vector<8x128xf32> to vector<8x32xf32>
    %140 = vector.extract_strided_slice %138 {offsets = [0, 32], sizes = [8, 32], strides = [1, 1]} : vector<8x128xf32> to vector<8x32xf32>
    %141 = vector.extract_strided_slice %138 {offsets = [0, 64], sizes = [8, 32], strides = [1, 1]} : vector<8x128xf32> to vector<8x32xf32>
    %142 = vector.extract_strided_slice %138 {offsets = [0, 96], sizes = [8, 32], strides = [1, 1]} : vector<8x128xf32> to vector<8x32xf32>
    %143 = arith.mulf %140, %127 : vector<8x32xf32>
    %144 = arith.mulf %139, %141 : vector<8x32xf32>
    %145 = arith.addf %143, %144 : vector<8x32xf32>
    %146 = math.tanh %145 : vector<8x32xf32>
    %147 = arith.mulf %142, %146 : vector<8x32xf32>
    %148 = vector.extract_strided_slice %6 {offsets = [56, 0], sizes = [8, 128], strides = [1, 1]} : vector<64x128xf32> to vector<8x128xf32>
    %149 = arith.truncf %147 : vector<8x32xf32> to vector<8x32xbf16>
    %cst_20 = arith.constant dense<0.000000e+00> : vector<8x128xf32>
    %150 = tpu.matmul %149, %7, %cst_20 {dimension_numbers = #tpu.dot_dimension_numbers<[1], [0], [0], [1], [0, 0, 1, 1], [], []>} : vector<8x32xbf16>, vector<32x128xbf16>, vector<8x128xf32> -> vector<8x128xf32>
    %151 = arith.addf %148, %150 : vector<8x128xf32>
    %152 = math.tanh %151 : vector<8x128xf32>
    %153 = vector.broadcast %16 : vector<1x128xf32> to vector<8x128xf32>
    %154 = arith.mulf %153, %152 : vector<8x128xf32>
    %155 = vector.broadcast %19 : vector<1x128xf32> to vector<8x128xf32>
    %156 = arith.addf %154, %155 : vector<8x128xf32>
    %157 = vector.extract_strided_slice %156 {offsets = [0, 0], sizes = [8, 32], strides = [1, 1]} : vector<8x128xf32> to vector<8x32xf32>
    %158 = vector.extract_strided_slice %156 {offsets = [0, 32], sizes = [8, 32], strides = [1, 1]} : vector<8x128xf32> to vector<8x32xf32>
    %159 = vector.extract_strided_slice %156 {offsets = [0, 64], sizes = [8, 32], strides = [1, 1]} : vector<8x128xf32> to vector<8x32xf32>
    %160 = vector.extract_strided_slice %156 {offsets = [0, 96], sizes = [8, 32], strides = [1, 1]} : vector<8x128xf32> to vector<8x32xf32>
    %161 = arith.mulf %158, %145 : vector<8x32xf32>
    %162 = arith.mulf %157, %159 : vector<8x32xf32>
    %163 = arith.addf %161, %162 : vector<8x32xf32>
    %164 = math.tanh %163 : vector<8x32xf32>
    %165 = arith.mulf %160, %164 : vector<8x32xf32>
    %166 = arith.truncf %165 : vector<8x32xf32> to vector<8x32xbf16>
    %c0_21 = arith.constant 0 : index
    %c0_22 = arith.constant 0 : index
    %167 = vector.load %arg5[%c0_21, %c0_22] : memref<32x8xbf16, #tpu.memory_space<vmem>>, vector<32x8xbf16>
    %cst_23 = arith.constant dense<0.000000e+00> : vector<8x8xf32>
    %168 = tpu.matmul %166, %167, %cst_23 {dimension_numbers = #tpu.dot_dimension_numbers<[1], [0], [0], [1], [0, 0, 1, 1], [], []>} : vector<8x32xbf16>, vector<32x8xbf16>, vector<8x8xf32> -> vector<8x8xf32>
    %c0_24 = arith.constant 0 : index
    %c0_25 = arith.constant 0 : index
    %169 = vector.load %arg6[%c0_24, %c0_25] : memref<1x8xf32, #tpu.memory_space<vmem>>, vector<1x8xf32>
    %170 = vector.broadcast %169 : vector<1x8xf32> to vector<8x8xf32>
    %171 = arith.addf %168, %170 : vector<8x8xf32>
    %c0_26 = arith.constant 0 : index
    %c0_27 = arith.constant 0 : index
    %172 = vector.load %arg7[%c0_26, %c0_27] : memref<8x8xf32, #tpu.memory_space<vmem>>, vector<8x8xf32>
    tpu.vector_store %arg7[%c0_26, %c0_27], %171 {strides = array<i32>} : memref<8x8xf32, #tpu.memory_space<vmem>>, vector<8x8xf32>,
    return
  }
  func.func @transform_0(%arg0: i32) -> (i32, i32) {
    %c0_i32 = arith.constant 0 : i32
    %c0_i32_0 = arith.constant 0 : i32
    %c0_i32_1 = arith.constant 0 : i32
    return %c0_i32, %c0_i32_0 : i32, i32
  }
  func.func @transform_1(%arg0: i32) -> (i32, i32) {
    %c0_i32 = arith.constant 0 : i32
    %c0_i32_0 = arith.constant 0 : i32
    %c0_i32_1 = arith.constant 0 : i32
    return %c0_i32, %c0_i32_0 : i32, i32
  }
  func.func @transform_2(%arg0: i32) -> (i32, i32) {
    %c0_i32 = arith.constant 0 : i32
    %c0_i32_0 = arith.constant 0 : i32
    %c0_i32_1 = arith.constant 0 : i32
    return %c0_i32, %c0_i32_0 : i32, i32
  }
  func.func @transform_3(%arg0: i32) -> (i32, i32) {
    %c0_i32 = arith.constant 0 : i32
    %c0_i32_0 = arith.constant 0 : i32
    %c0_i32_1 = arith.constant 0 : i32
    return %c0_i32, %c0_i32_0 : i32, i32
  }
  func.func @transform_4(%arg0: i32) -> (i32, i32) {
    %c0_i32 = arith.constant 0 : i32
    %c0_i32_0 = arith.constant 0 : i32
    %c0_i32_1 = arith.constant 0 : i32
    return %c0_i32, %c0_i32_0 : i32, i32
  }
  func.func @transform_5(%arg0: i32) -> (i32, i32) {
    %c0_i32 = arith.constant 0 : i32
    %c0_i32_0 = arith.constant 0 : i32
    %c0_i32_1 = arith.constant 0 : i32
    return %c0_i32, %c0_i32_0 : i32, i32
  }
  func.func @transform_6(%arg0: i32) -> (i32, i32) {
    %c0_i32 = arith.constant 0 : i32
    %c0_i32_0 = arith.constant 0 : i32
    %c0_i32_1 = arith.constant 0 : i32
    return %c0_i32, %c0_i32_0 : i32, i32
  }
}

</mosaic_0001>

<bundles_post_ra>
// kernel: lstm_model_forward.1
= control target key start
LH: loop header
LB: loop body
LE: loop exit
PB: predicated region body
PF: predicated region fallthrough
CT: control target
= control target key end

     0   :  { %v945_v0 = vmov 0.0   ;;  %vm946_vm0 = vmmov 0   ;;  %vm51_vm1 = vcmask 130048   ;;  %v947_v10 = vmov 0   ;;  %s950_s11 = smov 32   ;;  %s1182_s1 = inlined_call_operand.vmem [shape: bf16[16,128], index: 1, kind: input, shape index: {}]   ;;  %s1183_s2 = inlined_call_operand.vmem [shape: bf16[32,128], index: 2, kind: input, shape index: {}]   ;;  %s1184_s0 = inlined_call_operand.vmem [shape: f32[64,16], index: 0, kind: input, shape index: {}]   ;;  %s1185_s3 = inlined_call_operand.vmem [shape: f32[1,128], index: 3, kind: input, shape index: {}]   ;;  %s1186_s4 = inlined_call_operand.vmem [shape: bf16[32,8], index: 4, kind: input, shape index: {}]   ;;  %s1187_s5 = inlined_call_operand.vmem [shape: f32[1,8], index: 5, kind: input, shape index: {}]   ;;  %s1188_s6 = inlined_call_operand.vmem [shape: f32[8,8], index: 6, kind: output, shape index: {}]  }
   0x1   :  { %830 = vmatprep.subr.bf16.mxu1 %v945_v0  ;;  %v908_v1 = vld [vmem:[%s1182_s1] sm:$0xff]   ;;  %834 = vmatprep.mubr.msk.bf16.mxu1 %vm946_vm0, %v945_v0  ;;  %v25_v4 = vld [vmem:[%s1184_s0 + $0x8] sm:$0xff]  ;;  %v26_v5 = vld [vmem:[%s1184_s0 + $0x10] sm:$0xff]  ;;  %v133_v14 = vlaneseq  ;;  %v948_v24 = vmov 0.5   ;;  %vm152_vm5 = vcmask 261120   ;;  %vm763_vm6 = vcmask 64512  }
   0x2   :  { %v995_v2 = vld [vmem:[%s1183_s2] sm:$0xff]   ;;  %820 = vmatprep.subr.bf16.mxu0 %v908_v1  ;;  %v27_v7 = vld [vmem:[%s1184_s0 + $0x18] sm:$0xff]  ;;  %v1014_v9 = vld [vmem:[%s1183_s2 + $0x8] sm:$0xff]  }
   0x3   :  { %v24_v3 = vld [vmem:[%s1184_s0] sm:$0xff]  ;;  %831 = vmatpush3.bf16.msra.mxu1 %v995_v2  ;;  %821 = vmatpush3.bf16.msra.mxu0 %v908_v1  ;;  %v33_v8 = vpack.c.bf16 %v27_v7, %v26_v5  ;;  %v134_v21 = vand.u32 127, %v133_v14  ;;  %v29_v55 = vld [vmem:[%s1184_s0 + $0x28] sm:$0xff]  ;;  %v30_v56 = vld [vmem:[%s1184_s0 + $0x30] sm:$0xff] }
   0x4   :  { %v32_v6 = vpack.c.bf16 %v25_v4, %v24_v3  ;;  %832 = vmatprep.subr.bf16.mxu1 %v945_v0  ;;  %846 = vmatprep.subr.bf16.mxu0 %v945_v0  ;;  %v1034_v11 = vld [vmem:[%s1185_s3] ss:$0 sm:$0xff]  ;;  %s949_s3 = smov 64   ;;  %v31_v58 = vld [vmem:[%s1184_s0 + $0x38] sm:$0xff] }
   0x5   :  { %vm135_vm2 = vcmp.ge.s32.totalorder %v134_v21, 64  ;;  %vm136_vm3 = vcmp.lt.s32.totalorder %v134_v21, 96  ;;  %v28_v54 = vld [vmem:[%s1184_s0 + $0x20] sm:$0xff]  ;;  %v35_v59 = vpack.c.bf16 %v31_v58, %v30_v56 }
   0x6   :  { %822 = vmatprep.mubr.msk.bf16.mxu0 %vm51_vm1, %v32_v6  ;;  %vm137_vm4 = vmand %vm135_vm2, %vm136_vm3  ;;  %v34_v57 = vpack.c.bf16 %v29_v55, %v28_v54 }
   0x7   :  { %823 = vmatmul.mubr.msk.bf16.vlgmr.msra.gmra.mrb[0].mxu0 %vm51_vm1, %v33_v8  ;;  %833 = vmatpush3.bf16.msra.mxu1 %v1014_v9  ;;  %v1041_v25 = vsel %vm137_vm4, 1.0, %v948_v24  ;;  %v1043_v27 = vsel %vm137_vm4, 0.0, %v948_v24 }
   0x8   :  { %847 = vmatpush3.bf16.msra.mxu0 %v995_v2  ;;  %838 = vmatprep.subr.bf16.mxu1 %v945_v0 }
   0x9   :  { %848 = vmatprep.subr.bf16.mxu0 %v945_v0  ;;  %826 = vmatprep.mubr.msk.bf16.mxu0 %vm51_vm1, %v34_v57 }
   0xa   :  { %835 = vmatmul.mubr.bf16.vlgmr.msra.gmra.mrb[0].mxu1 %v947_v10 }
   0xb   :  { %839 = vmatpush3.bf16.msra.mxu1 %v995_v2  ;;  %842 = vmatprep.mubr.msk.bf16.mxu1 %vm946_vm0, %v945_v0 }
   0xc   :  { %840 = vmatprep.subr.bf16.mxu1 %v945_v0  ;;  %849 = vmatpush3.bf16.msra.mxu0 %v1014_v9 }
   0xd   :  { %862 = vmatprep.subr.bf16.mxu0 %v945_v0 }
   0xf   :  { %841 = vmatpush3.bf16.msra.mxu1 %v1014_v9  ;;  %827 = vmatmul.mubr.msk.bf16.gmra.mrb[4].mxu0 %vm51_vm1, %v35_v59 }
  0x10   :  { %854 = vmatprep.subr.bf16.mxu1 %v945_v0  ;;  %850 = vmatprep.mubr.msk.bf16.mxu0 %vm946_vm0, %v945_v0 }
  0xda   :  { %v1036_v12 = vpop.f32.mrb[0].mxu0 }
  0xdb   :  { %v98_v13 = vpop.f32.mrb[1].mxu0  ;;  %v107_v7 = vadd.f32 %v1036_v12, %v1034_v11 }
  0xdc   :  { %v99_v15 = vadd.f32 %v1034_v11, %v98_v13  ;;  %v1039_v16 = vpop.f32.mrb[2].mxu0 }
  0xdd   :  { %v101_v17 = vpop.f32.mrb[3].mxu0  ;;  %v190_v18 = vpop.f32.mrb[0].mxu1 }
  0xde   :  { %v196_v19 = vadd.f32 %v190_v18, %v99_v15  ;;  %v836_v20 = vpop.f32.mrb[1].mxu1  ;;  %v102_v40 = vadd.f32 %v1034_v11, %v101_v17 }
  0xdf   :  { %v193_v22 = vpop.f32.mrb[2].mxu1 }
  0xe0   :  { %913 = vtanh.f32 %v196_v19  ;;  %v837_v23 = vpop.f32.mrb[3].mxu1 }
  0xe2   :  { %v1081_v1 = vpop.f32.mrb[4].mxu0 }
  0xe3   :  { %v1083_v3 = vpop.f32.mrb[5].mxu0 }
  0xe4   :  { %v1085_v4 = vpop.f32.mrb[6].mxu0 }
  0xe5   :  { %v1087_v5 = vpop.f32.mrb[7].mxu0 }
  0xea   :  { %v914_v26 = vpop.eup %913 }
  0xeb   :  { %v198_v28 = vmul.f32 %v914_v26, %v1041_v25 }
  0xed   :  { %v199_v29 = vadd.f32 %v198_v28, %v1043_v27 }
  0xef   :  { %202 = vrot.lane.b32.xlu0 %v199_v29, %s949_s3  ;;  %v200_v32 = vmul.f32 0.0, %v199_v29 }
 0x161   :  { %v203_v30 = vpop.permute.xlu0 %202 }
 0x162   :  { %v205_v31 = vmul.f32 %v203_v30, %v199_v29 }
 0x164   :  { %207 = vrot.lane.b32.xlu0 %v205_v31, %s950_s11  ;;  %v110_v31 = vadd.f32 %v1039_v16, %v1034_v11 }
 0x1d6   :  { %v208_v33 = vpop.permute.xlu0 %207 }
 0x1d7   :  { %v210_v34 = vadd.f32 %v208_v33, %v200_v32 }
 0x1d9   :  { %915 = vtanh.f32 %v210_v34 }
 0x1e3   :  { %v916_v35 = vpop.eup %915 }
 0x1e4   :  { %213 = vrot.lane.b32.xlu1 %v916_v35, %s949_s3 }
 0x256   :  { %v214_v36 = vpop.permute.xlu1 %213 }
 0x257   :  { %v216_v37 = vmul.f32 %v214_v36, %v199_v29 }
 0x259   :  { %v217_v38 = vpack.c.bf16 %v216_v37, %v216_v37 }
 0x25b   :  { %219 = vrot.lane.b32.xlu1 %v217_v38, %s950_s11 }
 0x2cd   :  { %v220_v39 = vpop.permute.xlu1 %219 }
 0x2ce   :  { %843 = vmatmul.mubr.msk.bf16.vlgmr.msra.gmra.mrb[4].mxu1 %vm152_vm5, %v220_v39 }
 0x2cf   :  { %855 = vmatpush3.bf16.msra.mxu1 %v995_v2  ;;  %858 = vmatprep.mubr.msk.bf16.mxu1 %vm946_vm0, %v945_v0 }
 0x2d0   :  { %856 = vmatprep.subr.bf16.mxu1 %v945_v0 }
 0x2d3   :  { %857 = vmatpush3.bf16.msra.mxu1 %v1014_v9 }
 0x2d4   :  { %870 = vmatprep.subr.bf16.mxu1 %v945_v0 }
 0x3a1   :  { %v258_v41 = vpop.f32.mrb[4].mxu1 }
 0x3a2   :  { %v264_v42 = vadd.f32 %v258_v41, %v102_v40  ;;  %v844_v43 = vpop.f32.mrb[5].mxu1 }
 0x3a3   :  { %v261_v44 = vpop.f32.mrb[6].mxu1 }
 0x3a4   :  { %917 = vtanh.f32 %v264_v42  ;;  %v845_v45 = vpop.f32.mrb[7].mxu1 }
 0x3ae   :  { %v918_v46 = vpop.eup %917 }
 0x3af   :  { %v266_v47 = vmul.f32 %v918_v46, %v1041_v25 }
 0x3b1   :  { %v267_v48 = vadd.f32 %v266_v47, %v1043_v27 }
 0x3b3   :  { %270 = vrot.lane.b32.xlu0 %v267_v48, %s949_s3  ;;  %v268_v51 = vmul.f32 %v267_v48, %v210_v34 }
 0x425   :  { %v271_v49 = vpop.permute.xlu0 %270 }
 0x426   :  { %v273_v50 = vmul.f32 %v271_v49, %v267_v48  ;;  %v115_v49 = vadd.f32 %v1034_v11, %v1083_v3 }
 0x428   :  { %275 = vrot.lane.b32.xlu1 %v273_v50, %s950_s11 }
 0x49a   :  { %v276_v52 = vpop.permute.xlu1 %275 }
 0x49b   :  { %v278_v53 = vadd.f32 %v276_v52, %v268_v51 }
 0x49d   :  { %919 = vtanh.f32 %v278_v53 }
 0x4a7   :  { %v920_v60 = vpop.eup %919 }
 0x4a8   :  { %281 = vrot.lane.b32.xlu0 %v920_v60, %s949_s3 }
 0x51a   :  { %v282_v61 = vpop.permute.xlu0 %281 }
 0x51b   :  { %v284_v62 = vmul.f32 %v282_v61, %v267_v48 }
 0x51d   :  { %v285_v63 = vpack.c.bf16 %v284_v62, %v284_v62 }
 0x51f   :  { %287 = vrot.lane.b32.xlu1 %v285_v63, %s950_s11 }
 0x591   :  { %v288_v6 = vpop.permute.xlu1 %287 }
 0x592   :  { %851 = vmatmul.mubr.msk.bf16.vlgmr.msra.gmra.mrb[8].mxu0 %vm152_vm5, %v288_v6 }
 0x593   :  { %863 = vmatpush3.bf16.msra.mxu0 %v995_v2  ;;  %866 = vmatprep.mubr.msk.bf16.mxu0 %vm946_vm0, %v945_v0 }
 0x594   :  { %864 = vmatprep.subr.bf16.mxu0 %v945_v0 }
 0x597   :  { %865 = vmatpush3.bf16.msra.mxu0 %v1014_v9 }
 0x598   :  { %878 = vmatprep.subr.bf16.mxu0 %v945_v0 }
 0x665   :  { %v326_v8 = vpop.f32.mrb[8].mxu0 }
 0x666   :  { %v332_v10 = vadd.f32 %v326_v8, %v107_v7  ;;  %v852_v13 = vpop.f32.mrb[9].mxu0 }
 0x667   :  { %v329_v14 = vpop.f32.mrb[10].mxu0 }
 0x668   :  { %921 = vtanh.f32 %v332_v10  ;;  %v853_v15 = vpop.f32.mrb[11].mxu0  ;;  %v118_v10 = vadd.f32 %v1034_v11, %v1087_v5 }
 0x672   :  { %v922_v17 = vpop.eup %921 }
 0x673   :  { %v334_v18 = vmul.f32 %v922_v17, %v1041_v25 }
 0x675   :  { %v335_v19 = vadd.f32 %v334_v18, %v1043_v27 }
 0x677   :  { %338 = vrot.lane.b32.xlu0 %v335_v19, %s949_s3  ;;  %v336_v22 = vmul.f32 %v335_v19, %v278_v53 }
 0x6e9   :  { %v339_v20 = vpop.permute.xlu0 %338 }
 0x6ea   :  { %v341_v21 = vmul.f32 %v339_v20, %v335_v19 }
 0x6ec   :  { %343 = vrot.lane.b32.xlu1 %v341_v21, %s950_s11 }
 0x75e   :  { %v344_v23 = vpop.permute.xlu1 %343 }
 0x75f   :  { %v346_v12 = vadd.f32 %v344_v23, %v336_v22 }
 0x761   :  { %923 = vtanh.f32 %v346_v12 }
 0x76b   :  { %v924_v24 = vpop.eup %923 }
 0x76c   :  { %349 = vrot.lane.b32.xlu0 %v924_v24, %s949_s3 }
 0x7de   :  { %v350_v26 = vpop.permute.xlu0 %349 }
 0x7df   :  { %v352_v28 = vmul.f32 %v350_v26, %v335_v19 }
 0x7e1   :  { %v353_v29 = vpack.c.bf16 %v352_v28, %v352_v28 }
 0x7e3   :  { %355 = vrot.lane.b32.xlu1 %v353_v29, %s950_s11 }
 0x855   :  { %v356_v30 = vpop.permute.xlu1 %355 }
 0x856   :  { %859 = vmatmul.mubr.msk.bf16.vlgmr.msra.gmra.mrb[8].mxu1 %vm152_vm5, %v356_v30  ;;  %v123_v30 = vadd.f32 %v1081_v1, %v1034_v11 }
 0x857   :  { %871 = vmatpush3.bf16.msra.mxu1 %v995_v2  ;;  %874 = vmatprep.mubr.msk.bf16.mxu1 %vm946_vm0, %v945_v0 }
 0x858   :  { %872 = vmatprep.subr.bf16.mxu1 %v945_v0 }
 0x85b   :  { %873 = vmatpush3.bf16.msra.mxu1 %v1014_v9 }
 0x85c   :  { %886 = vmatprep.subr.bf16.mxu1 %v945_v0 }
 0x929   :  { %v394_v32 = vpop.f32.mrb[8].mxu1 }
 0x92a   :  { %v400_v33 = vadd.f32 %v394_v32, %v110_v31  ;;  %v860_v34 = vpop.f32.mrb[9].mxu1 }
 0x92b   :  { %v397_v35 = vpop.f32.mrb[10].mxu1 }
 0x92c   :  { %925 = vtanh.f32 %v400_v33  ;;  %v861_v36 = vpop.f32.mrb[11].mxu1 }
 0x936   :  { %v926_v37 = vpop.eup %925 }
 0x937   :  { %v402_v38 = vmul.f32 %v926_v37, %v1041_v25 }
 0x939   :  { %v403_v39 = vadd.f32 %v402_v38, %v1043_v27 }
 0x93b   :  { %406 = vrot.lane.b32.xlu0 %v403_v39, %s949_s3  ;;  %v404_v42 = vmul.f32 %v403_v39, %v346_v12 }
 0x9ad   :  { %v407_v40 = vpop.permute.xlu0 %406 }
 0x9ae   :  { %v409_v41 = vmul.f32 %v407_v40, %v403_v39 }
 0x9b0   :  { %411 = vrot.lane.b32.xlu1 %v409_v41, %s950_s11 }
 0xa22   :  { %v412_v43 = vpop.permute.xlu1 %411 }
 0xa23   :  { %v414_v16 = vadd.f32 %v412_v43, %v404_v42 }
 0xa25   :  { %927 = vtanh.f32 %v414_v16 }
 0xa2f   :  { %v928_v44 = vpop.eup %927 }
 0xa30   :  { %417 = vrot.lane.b32.xlu0 %v928_v44, %s949_s3 }
 0xaa2   :  { %v418_v45 = vpop.permute.xlu0 %417 }
 0xaa3   :  { %v420_v46 = vmul.f32 %v418_v45, %v403_v39 }
 0xaa5   :  { %v421_v47 = vpack.c.bf16 %v420_v46, %v420_v46 }
 0xaa7   :  { %423 = vrot.lane.b32.xlu1 %v421_v47, %s950_s11  ;;  %v126_v47 = vadd.f32 %v1085_v4, %v1034_v11  ;;  %v911_v4 = vld [vmem:[%s1186_s4] sm:$0xff]  }
 0xb19   :  { %v424_v48 = vpop.permute.xlu1 %423 }
 0xb1a   :  { %867 = vmatmul.mubr.msk.bf16.vlgmr.msra.gmra.mrb[12].mxu0 %vm152_vm5, %v424_v48 }
 0xb1b   :  { %879 = vmatpush3.bf16.msra.mxu0 %v995_v2  ;;  %882 = vmatprep.mubr.msk.bf16.mxu0 %vm946_vm0, %v945_v0 }
 0xb1c   :  { %880 = vmatprep.subr.bf16.mxu0 %v945_v0 }
 0xb1f   :  { %881 = vmatpush3.bf16.msra.mxu0 %v1014_v9 }
 0xb20   :  { %894 = vmatprep.subr.bf16.mxu0 %v945_v0 }
 0xbed   :  { %v462_v50 = vpop.f32.mrb[12].mxu0 }
 0xbee   :  { %v468_v51 = vadd.f32 %v462_v50, %v115_v49  ;;  %v868_v52 = vpop.f32.mrb[13].mxu0 }
 0xbef   :  { %v465_v53 = vpop.f32.mrb[14].mxu0 }
 0xbf0   :  { %929 = vtanh.f32 %v468_v51  ;;  %v869_v54 = vpop.f32.mrb[15].mxu0 }
 0xbfa   :  { %v930_v55 = vpop.eup %929 }
 0xbfb   :  { %v470_v56 = vmul.f32 %v930_v55, %v1041_v25 }
 0xbfd   :  { %v471_v57 = vadd.f32 %v470_v56, %v1043_v27 }
 0xbff   :  { %474 = vrot.lane.b32.xlu0 %v471_v57, %s949_s3  ;;  %v472_v60 = vmul.f32 %v471_v57, %v414_v16 }
 0xc71   :  { %v475_v58 = vpop.permute.xlu0 %474 }
 0xc72   :  { %v477_v59 = vmul.f32 %v475_v58, %v471_v57 }
 0xc74   :  { %479 = vrot.lane.b32.xlu1 %v477_v59, %s950_s11 }
 0xce6   :  { %v480_v61 = vpop.permute.xlu1 %479 }
 0xce7   :  { %v482_v62 = vadd.f32 %v480_v61, %v472_v60 }
 0xce9   :  { %931 = vtanh.f32 %v482_v62 }
 0xcf3   :  { %v932_v63 = vpop.eup %931 }
 0xcf4   :  { %485 = vrot.lane.b32.xlu0 %v932_v63, %s949_s3 }
 0xd66   :  { %v486_v3 = vpop.permute.xlu0 %485 }
 0xd67   :  { %v488_v6 = vmul.f32 %v486_v3, %v471_v57  ;;  %v784_v3 = vld [vmem:[%s1187_s5] ss:$0 sm:$0xff] }
 0xd69   :  { %v489_v7 = vpack.c.bf16 %v488_v6, %v488_v6 }
 0xd6b   :  { %491 = vrot.lane.b32.xlu1 %v489_v7, %s950_s11 }
 0xddd   :  { %v492_v8 = vpop.permute.xlu1 %491 }
 0xdde   :  { %875 = vmatmul.mubr.msk.bf16.vlgmr.msra.gmra.mrb[12].mxu1 %vm152_vm5, %v492_v8 }
 0xddf   :  { %887 = vmatpush3.bf16.msra.mxu1 %v995_v2  ;;  %890 = vmatprep.mubr.msk.bf16.mxu1 %vm946_vm0, %v945_v0 }
 0xde0   :  { %888 = vmatprep.subr.bf16.mxu1 %v945_v0 }
 0xde3   :  { %889 = vmatpush3.bf16.msra.mxu1 %v1014_v9 }
 0xeb1   :  { %v530_v13 = vpop.f32.mrb[12].mxu1 }
 0xeb2   :  { %v536_v14 = vadd.f32 %v530_v13, %v118_v10  ;;  %v876_v15 = vpop.f32.mrb[13].mxu1 }
 0xeb3   :  { %v533_v17 = vpop.f32.mrb[14].mxu1 }
 0xeb4   :  { %933 = vtanh.f32 %v536_v14  ;;  %v877_v18 = vpop.f32.mrb[15].mxu1 }
 0xebe   :  { %v934_v19 = vpop.eup %933 }
 0xebf   :  { %v538_v20 = vmul.f32 %v934_v19, %v1041_v25 }
 0xec1   :  { %v539_v2 = vadd.f32 %v538_v20, %v1043_v27 }
 0xec3   :  { %542 = vrot.lane.b32.xlu0 %v539_v2, %s949_s3  ;;  %v540_v9 = vmul.f32 %v539_v2, %v482_v62 }
 0xf35   :  { %v543_v21 = vpop.permute.xlu0 %542 }
 0xf36   :  { %v545_v22 = vmul.f32 %v543_v21, %v539_v2 }
 0xf38   :  { %547 = vrot.lane.b32.xlu1 %v545_v22, %s950_s11 }
 0xfaa   :  { %v548_v23 = vpop.permute.xlu1 %547 }
 0xfab   :  { %v550_v5 = vadd.f32 %v548_v23, %v540_v9 }
 0xfad   :  { %935 = vtanh.f32 %v550_v5 }
 0xfb7   :  { %v936_v12 = vpop.eup %935 }
 0xfb8   :  { %553 = vrot.lane.b32.xlu0 %v936_v12, %s949_s3 }
0x102a   :  { %v554_v24 = vpop.permute.xlu0 %553 }
0x102b   :  { %v556_v26 = vmul.f32 %v554_v24, %v539_v2 }
0x102d   :  { %v557_v28 = vpack.c.bf16 %v556_v26, %v556_v26 }
0x102f   :  { %559 = vrot.lane.b32.xlu1 %v557_v28, %s950_s11 }
0x10a1   :  { %v560_v29 = vpop.permute.xlu1 %559 }
0x10a2   :  { %883 = vmatmul.mubr.msk.bf16.vlgmr.msra.gmra.mrb[16].mxu0 %vm152_vm5, %v560_v29 }
0x10a3   :  { %898 = vmatprep.mubr.msk.bf16.mxu0 %vm946_vm0, %v945_v0  ;;  %895 = vmatpush3.bf16.msra.mxu0 %v911_v4 }
0x10a4   :  { %896 = vmatprep.subr.bf16.mxu0 %v945_v0 }
0x1175   :  { %v598_v31 = vpop.f32.mrb[16].mxu0 }
0x1176   :  { %v604_v32 = vadd.f32 %v598_v31, %v123_v30  ;;  %v884_v33 = vpop.f32.mrb[17].mxu0 }
0x1177   :  { %v601_v34 = vpop.f32.mrb[18].mxu0 }
0x1178   :  { %937 = vtanh.f32 %v604_v32  ;;  %v885_v35 = vpop.f32.mrb[19].mxu0 }
0x1182   :  { %v938_v36 = vpop.eup %937 }
0x1183   :  { %v606_v37 = vmul.f32 %v938_v36, %v1041_v25 }
0x1185   :  { %v607_v38 = vadd.f32 %v606_v37, %v1043_v27 }
0x1187   :  { %610 = vrot.lane.b32.xlu0 %v607_v38, %s949_s3  ;;  %v608_v41 = vmul.f32 %v607_v38, %v550_v5 }
0x11f9   :  { %v611_v39 = vpop.permute.xlu0 %610 }
0x11fa   :  { %v613_v40 = vmul.f32 %v611_v39, %v607_v38 }
0x11fc   :  { %615 = vrot.lane.b32.xlu1 %v613_v40, %s950_s11 }
0x126e   :  { %v616_v42 = vpop.permute.xlu1 %615 }
0x126f   :  { %v618_v1 = vadd.f32 %v616_v42, %v608_v41 }
0x1271   :  { %939 = vtanh.f32 %v618_v1 }
0x127b   :  { %v940_v43 = vpop.eup %939 }
0x127c   :  { %621 = vrot.lane.b32.xlu0 %v940_v43, %s949_s3 }
0x12ee   :  { %v622_v16 = vpop.permute.xlu0 %621 }
0x12ef   :  { %v624_v44 = vmul.f32 %v622_v16, %v607_v38 }
0x12f1   :  { %v625_v45 = vpack.c.bf16 %v624_v44, %v624_v44 }
0x12f3   :  { %627 = vrot.lane.b32.xlu1 %v625_v45, %s950_s11 }
0x1365   :  { %v628_v46 = vpop.permute.xlu1 %627 }
0x1366   :  { %891 = vmatmul.mubr.msk.bf16.vlgmr.msra.gmra.mrb[16].mxu1 %vm152_vm5, %v628_v46 }
0x1439   :  { %v666_v48 = vpop.f32.mrb[16].mxu1 }
0x143a   :  { %v672_v49 = vadd.f32 %v666_v48, %v126_v47  ;;  %v892_v50 = vpop.f32.mrb[17].mxu1 }
0x143b   :  { %v669_v51 = vpop.f32.mrb[18].mxu1 }
0x143c   :  { %941 = vtanh.f32 %v672_v49  ;;  %v893_v52 = vpop.f32.mrb[19].mxu1 }
0x1446   :  { %v942_v53 = vpop.eup %941 }
0x1447   :  { %v674_v54 = vmul.f32 %v942_v53, %v1041_v25  ;;  %v912_v25 = vld [vmem:[%s1186_s4 + $0x8] sm:$0xff]  }
0x1448   :  { %897 = vmatpush3.bf16.msra.mxu0 %v912_v25 }
0x1449   :  { %v675_v55 = vadd.f32 %v674_v54, %v1043_v27 }
0x144b   :  { %678 = vrot.lane.b32.xlu0 %v675_v55, %s949_s3  ;;  %v676_v58 = vmul.f32 %v675_v55, %v618_v1 }
0x14bd   :  { %v679_v56 = vpop.permute.xlu0 %678 }
0x14be   :  { %v681_v57 = vmul.f32 %v679_v56, %v675_v55 }
0x14c0   :  { %683 = vrot.lane.b32.xlu1 %v681_v57, %s950_s11 }
0x1532   :  { %v684_v59 = vpop.permute.xlu1 %683 }
0x1533   :  { %v686_v11 = vadd.f32 %v684_v59, %v676_v58 }
0x1535   :  { %943 = vtanh.f32 %v686_v11 }
0x153f   :  { %v944_v27 = vpop.eup %943 }
0x1540   :  { %689 = vrot.lane.b32.xlu0 %v944_v27, %s949_s3 }
0x15b2   :  { %v690_v60 = vpop.permute.xlu0 %689 }
0x15b3   :  { %v692_v61 = vmul.f32 %v690_v60, %v675_v55 }
0x15b5   :  { %v693_v62 = vpack.c.bf16 %v692_v61, %v692_v61 }
0x15b7   :  { %706 = vrot.lane.b32.xlu1 %v693_v62, %s950_s11 }
0x1629   :  { %v707_v63 = vpop.permute.xlu1 %706 }
0x162a   :  { %899 = vmatmul.mubr.msk.bf16.vlgmr.msra.gmra.mrb[20].mxu0 %vm152_vm5, %v707_v63 }
0x16fd   :  { %v757_v6 = vpop.f32.mrb[20].mxu0 }
0x16fe   :  { %v758_v7 = vadd.f32 %v784_v3, %v757_v6  ;;  %v900_v0 = vpop.f32.mrb[21].mxu0 }
0x16ff   :  { %v760_v8 = vpop.f32.mrb[22].mxu0 }
0x1700   :  { %764 = vst.msk [vmem:[%s1188_s6] sm:$0xff] %vm763_vm6, %v758_v7  ;;  %v901_v10 = vpop.f32.mrb[23].mxu0 }

</bundles_post_ra>
